<compile_context>
chip_gen: v7x
topology: tpu7x:2x2x1
jax: 0.10.0
libtpu: 0.0.40
codegen_flags: <defaults>
</compile_context>

<pallas_src>
import math

import jax
import jax.numpy as jnp
from jax.experimental import pallas as pl
from jax.experimental.pallas import tpu as pltpu


def _round_up(x: int, m: int) -> int:
    return ((x + m - 1) // m) * m


def _tpu_kind() -> str:
    try:
        return jax.devices()[0].device_kind.lower()
    except Exception:
        return ""


def _vmem_capacity_bytes() -> int:
    try:
        info = pltpu.get_tpu_info()
        cap = getattr(info, "vmem_capacity_bytes", None)
        if cap:
            return int(cap)
    except Exception:
        pass
    return 64 << 20  # conservative: v7x per-TC VMEM


def _pick_batch_tile(batch: int, *, max_tile: int, min_steps: int):
    """Pick a bf16-friendly (multiple-of-16) batch tile minimizing padding waste
    plus a small per-grid-step overhead proxy; prefer >= min_steps steps."""
    best = None
    for tile in range(16, max(max_tile, 16) + 1, 16):
        bp = _round_up(max(batch, 1), tile)
        steps = bp // tile
        waste = bp - batch
        key = (steps < min_steps, waste + 16 * steps, -tile)
        if best is None or key < best[0]:
            best = (key, tile, bp)
    return best[1], best[2]


# ---------------------------------------------------------------------------
# Kernel
# ---------------------------------------------------------------------------
def gru_cell_kernel(x_ref, h_ref, wcat_ref, bcat_ref, uzr_ref, uh_ref, out_ref):
    """One batch tile; 3 fused MXU matmuls, f32 gate math."""
    Hp = h_ref.shape[1]

    x = x_ref[...]                       # (TB, Ip)   bf16
    h = h_ref[...]                       # (TB, Hp)   bf16
    hf = h.astype(jnp.float32)

    # Fused input->hidden matmul for all three gates + single fused bias add.
    gx = (
        jnp.dot(x, wcat_ref[...], preferred_element_type=jnp.float32)
        + bcat_ref[...]
    )                                    # (TB, 3*Hp) f32
    # Fused hidden->hidden matmul for the z and r gates.
    ghzr = jnp.dot(h, uzr_ref[...], preferred_element_type=jnp.float32)  # (TB, 2*Hp)

    z = jax.nn.sigmoid(gx[:, :Hp] + ghzr[:, :Hp])
    r = jax.nn.sigmoid(gx[:, Hp:2 * Hp] + ghzr[:, Hp:2 * Hp])

    # Candidate: tanh(W_h x + b_h + U_h (r * h)).
    rh = (r * hf).astype(uh_ref.dtype)
    h_tilde = jnp.tanh(
        gx[:, 2 * Hp:]
        + jnp.dot(rh, uh_ref[...], preferred_element_type=jnp.float32)
    )

    # (1 - z) * h_tilde + z * h  ==  h_tilde + z * (h - h_tilde)
    out_ref[...] = (h_tilde + z * (hf - h_tilde)).astype(out_ref.dtype)


# ---------------------------------------------------------------------------
# Weight packing (do ONCE, cache the result, reuse across calls)
# ---------------------------------------------------------------------------
def pack_gru_params(params, *, compute_dtype=jnp.bfloat16):
    """Pad + fuse + cast gate weights to TPU-friendly layout.

    Returns a dict to be passed to gru_cell(); cache it — do not rebuild per
    call (the repacking reads/writes every weight byte in HBM).
    """
    input_size, hidden = params["W_z"].shape
    Ip = _round_up(input_size, 128)
    Hp = _round_up(hidden, 128)
    cd = compute_dtype

    def pad2(a, rows, cols):
        return jnp.pad(a, ((0, rows - a.shape[0]), (0, cols - a.shape[1])))

    w_cat = jnp.concatenate(
        [pad2(params["W_z"].astype(cd), Ip, Hp),
         pad2(params["W_r"].astype(cd), Ip, Hp),
         pad2(params["W_h"].astype(cd), Ip, Hp)], axis=1)            # (Ip, 3Hp)
    u_zr = jnp.concatenate(
        [pad2(params["U_z"].astype(cd), Hp, Hp),
         pad2(params["U_r"].astype(cd), Hp, Hp)], axis=1)            # (Hp, 2Hp)
    u_h = pad2(params["U_h"].astype(cd), Hp, Hp)                     # (Hp, Hp)
    b_cat = jnp.concatenate(
        [pad2(params["b_z"].astype(jnp.float32).reshape(1, -1), 1, Hp),
         pad2(params["b_r"].astype(jnp.float32).reshape(1, -1), 1, Hp),
         pad2(params["b_h"].astype(jnp.float32).reshape(1, -1), 1, Hp)],
        axis=1)                                                       # (1, 3Hp) f32

    return {
        "w_cat": w_cat, "u_zr": u_zr, "u_h": u_h, "b_cat": b_cat,
        "input_size": input_size, "hidden_size": hidden,
        "Ip": Ip, "Hp": Hp, "compute_dtype": cd,
    }


# ---------------------------------------------------------------------------
# Wrapper
# ---------------------------------------------------------------------------
def gru_cell(x, h, packed, *, batch_tile=None):
    """GRU cell forward with pre-packed weights.  x: (B, I), h: (B, H) -> (B, H)."""
    batch = x.shape[0]
    input_size = packed["input_size"]
    hidden = packed["hidden_size"]
    Ip, Hp = packed["Ip"], packed["Hp"]
    cd = packed["compute_dtype"]
    out_dtype = x.dtype

    w_cat, u_zr, u_h, b_cat = (
        packed["w_cat"], packed["u_zr"], packed["u_h"], packed["b_cat"])

    kind = _tpu_kind()
    if batch_tile is None:
        # v6e: 2x256 MXU -> allow M=256; v5e/v7x: 128 MXU height, keep <=128.
        max_tile = 256 if ("v6" in kind or "trillium" in kind) else 128
        # v7x has 2 TensorCores; give the "parallel" batch axis >=2 grid steps.
        min_steps = 2 if ("v7" in kind and _round_up(batch, 16) >= 32) else 1
        batch_tile, Bp = _pick_batch_tile(batch, max_tile=max_tile,
                                          min_steps=min_steps)
    else:
        batch_tile = _round_up(batch_tile, 16)
        Bp = _round_up(batch, batch_tile)

    def pad2(a, rows, cols):
        return jnp.pad(a, ((0, rows - a.shape[0]), (0, cols - a.shape[1])))

    xc = pad2(x.astype(cd), Bp, Ip)
    hc = pad2(h.astype(cd), Bp, Hp)

    grid = (Bp // batch_tile,)

    # --- VMEM budget from actual live buffers ------------------------------
    isz = lambda dt: jnp.dtype(dt).itemsize
    weight_bytes = ((w_cat.size + u_zr.size + u_h.size) * isz(cd)
                    + b_cat.size * 4)                      # single-buffered
    stream_bytes = 2 * (batch_tile * Ip * isz(cd)          # x tile (dbl-buf)
                        + batch_tile * Hp * isz(cd)        # h tile
                        + batch_tile * Hp * isz(out_dtype))  # out tile
    interm_bytes = batch_tile * (3 * Hp + 2 * Hp + 3 * Hp) * 4  # gx, ghzr, z/r/h~
    budget = weight_bytes + stream_bytes + interm_bytes + (2 << 20)
    vmem_cap = _vmem_capacity_bytes() - (8 << 20)
    vmem_limit = int(min(max(budget, 16 << 20), max(vmem_cap, 32 << 20)))

    flops = 2 * Bp * (Ip * 3 * Hp + Hp * 2 * Hp + Hp * Hp)
    transcendentals = 3 * Bp * Hp
    bytes_accessed = (
        xc.size * isz(cd) + hc.size * isz(cd) + w_cat.size * isz(cd)
        + b_cat.size * 4 + u_zr.size * isz(cd) + u_h.size * isz(cd)
        + Bp * Hp * isz(out_dtype)
    )

    def _call(use_buffered: bool):
        wkw = {"pipeline_mode": pl.Buffered(1)} if use_buffered else {}
        in_specs = [
            pl.BlockSpec((batch_tile, Ip), lambda i: (i, 0)),    # x: streamed
            pl.BlockSpec((batch_tile, Hp), lambda i: (i, 0)),    # h: streamed
            pl.BlockSpec((Ip, 3 * Hp), lambda i: (0, 0), **wkw),  # W_cat resident
            pl.BlockSpec((1, 3 * Hp), lambda i: (0, 0), **wkw),   # b_cat resident
            pl.BlockSpec((Hp, 2 * Hp), lambda i: (0, 0), **wkw),  # U_zr resident
            pl.BlockSpec((Hp, Hp), lambda i: (0, 0), **wkw),      # U_h resident
        ]
        return pl.pallas_call(
            gru_cell_kernel,
            out_shape=jax.ShapeDtypeStruct((Bp, Hp), out_dtype),
            grid=grid,
            in_specs=in_specs,
            out_specs=pl.BlockSpec((batch_tile, Hp), lambda i: (i, 0)),
            compiler_params=pltpu.CompilerParams(
                dimension_semantics=("parallel",),
                vmem_limit_bytes=vmem_limit,
            ),
            cost_estimate=pl.CostEstimate(
                flops=int(flops),
                transcendentals=int(transcendentals),
                bytes_accessed=int(bytes_accessed),
            ),
        )(xc, hc, w_cat, b_cat, u_zr, u_h)

    use_buffered = hasattr(pl, "Buffered")
    try:
        out_padded = _call(use_buffered)
    except Exception:
        if not use_buffered:
            raise
        out_padded = _call(False)   # fallback: default double-buffering

    return out_padded[:batch, :hidden]


# ---------------------------------------------------------------------------
# Params / references
# ---------------------------------------------------------------------------
def init_params(key, input_size, hidden_size, dtype=jnp.float32):
    """Mirror torch.nn.Linear default init U[-k, k], k = 1/sqrt(fan_in).

    Weights stored transposed as (in_features, out_features); biases as (1, H).
    """
    keys = jax.random.split(key, 9)
    k_in = 1.0 / math.sqrt(input_size)
    k_h = 1.0 / math.sqrt(hidden_size)

    def u(k, shape, bound):
        return jax.random.uniform(k, shape, dtype, minval=-bound, maxval=bound)

    return {
        "W_z": u(keys[0], (input_size, hidden_size), k_in),
        "b_z": u(keys[1], (1, hidden_size), k_in),
        "U_z": u(keys[2], (hidden_size, hidden_size), k_h),
        "W_r": u(keys[3], (input_size, hidden_size), k_in),
        "b_r": u(keys[4], (1, hidden_size), k_in),
        "U_r": u(keys[5], (hidden_size, hidden_size), k_h),
        "W_h": u(keys[6], (input_size, hidden_size), k_in),
        "b_h": u(keys[7], (1, hidden_size), k_in),
        "U_h": u(keys[8], (hidden_size, hidden_size), k_h),
    }


def gru_cell_ref_mixed(x, h, p, compute_dtype=jnp.bfloat16):
    """Pure-JAX reference with the SAME bf16-in / f32-accumulate numerics."""
    cd = compute_dtype
    xc, hc = x.astype(cd), h.astype(cd)

    def dot(a, b):
        return jnp.dot(a, b.astype(cd), preferred_element_type=jnp.float32)

    z = jax.nn.sigmoid(dot(xc, p["W_z"]) + p["b_z"] + dot(hc, p["U_z"]))
    r = jax.nn.sigmoid(dot(xc, p["W_r"]) + p["b_r"] + dot(hc, p["U_r"]))
    hf = hc.astype(jnp.float32)
    rh = (r * hf).astype(cd)
    h_tilde = jnp.tanh(dot(xc, p["W_h"]) + p["b_h"] + dot(rh, p["U_h"]))
    return (h_tilde + z * (hf - h_tilde)).astype(x.dtype)


def gru_cell_ref_f32(x, h, p):
    """Full-precision reference matching the PyTorch module forward exactly."""
    z = jax.nn.sigmoid(x @ p["W_z"] + p["b_z"] + h @ p["U_z"])
    r = jax.nn.sigmoid(x @ p["W_r"] + p["b_r"] + h @ p["U_r"])
    h_tilde = jnp.tanh(x @ p["W_h"] + p["b_h"] + (r * h) @ p["U_h"])
    return (1.0 - z) * h_tilde + z * h


if __name__ == "__main__":
    batch, input_size, hidden_size = 2, 16, 32

    key = jax.random.PRNGKey(0)
    k_x, k_h, k_p = jax.random.split(key, 3)

    x = jax.random.normal(k_x, (batch, input_size), jnp.float32)
    h = jax.random.normal(k_h, (batch, hidden_size), jnp.float32)
    params = init_params(k_p, input_size, hidden_size)

    # Pack weights ONCE (cache this in real use), then run the kernel.
    packed = pack_gru_params(params)
    h_new = gru_cell(x, h, packed)
    jax.block_until_ready(h_new)

    assert h_new.shape == (batch, hidden_size)

    # Exact-numerics check against a reference using identical bf16/f32 mixing.
    h_ref_mixed = gru_cell_ref_mixed(x, h, params)
    assert jnp.allclose(h_new, h_ref_mixed, atol=1e-4, rtol=1e-4)

    # Looser check against the full-f32 PyTorch-equivalent forward.
    h_ref_f32 = gru_cell_ref_f32(x, h, params)
    assert jnp.allclose(h_new, h_ref_f32, atol=5e-2, rtol=5e-2)

    print("KERNEL_OK")
</pallas_src>

<mosaic_0001>
module attributes {stable_mosaic.version = 11 : i64} {
  func.func @gru_cell_kernel(%arg0: i32, %arg1: memref<16x128xbf16, #tpu.memory_space<vmem>>, %arg2: memref<16x128xbf16, #tpu.memory_space<vmem>>, %arg3: memref<128x384xbf16, #tpu.memory_space<vmem>>, %arg4: memref<1x384xf32, #tpu.memory_space<vmem>>, %arg5: memref<128x256xbf16, #tpu.memory_space<vmem>>, %arg6: memref<128x128xbf16, #tpu.memory_space<vmem>>, %arg7: memref<16x128xf32, #tpu.memory_space<vmem>>) attributes {dimension_semantics = [#tpu.dimension_semantics<parallel>], iteration_bounds = array<i64: 1>, scalar_prefetch = 0 : i64, scratch_operands = 0 : i64, tpu.core_type = #tpu.core_type<tc>, window_params = [{transform_indices = @transform_0, window_bounds = array<i64: 16, 128>}, {transform_indices = @transform_1, window_bounds = array<i64: 16, 128>}, {pipeline_mode = #tpu.pipeline_mode<synchronous>, transform_indices = @transform_2, window_bounds = array<i64: 128, 384>}, {pipeline_mode = #tpu.pipeline_mode<synchronous>, transform_indices = @transform_3, window_bounds = array<i64: 1, 384>}, {pipeline_mode = #tpu.pipeline_mode<synchronous>, transform_indices = @transform_4, window_bounds = array<i64: 128, 256>}, {pipeline_mode = #tpu.pipeline_mode<synchronous>, transform_indices = @transform_5, window_bounds = array<i64: 128, 128>}, {transform_indices = @transform_6, window_bounds = array<i64: 16, 128>}]} {
    %c0 = arith.constant 0 : index
    %c0_0 = arith.constant 0 : index
    %0 = vector.load %arg1[%c0, %c0_0] : memref<16x128xbf16, #tpu.memory_space<vmem>>, vector<16x128xbf16>
    %c0_1 = arith.constant 0 : index
    %c0_2 = arith.constant 0 : index
    %1 = vector.load %arg2[%c0_1, %c0_2] : memref<16x128xbf16, #tpu.memory_space<vmem>>, vector<16x128xbf16>
    %2 = arith.extf %1 : vector<16x128xbf16> to vector<16x128xf32>
    %c0_3 = arith.constant 0 : index
    %c0_4 = arith.constant 0 : index
    %3 = vector.load %arg3[%c0_3, %c0_4] : memref<128x384xbf16, #tpu.memory_space<vmem>>, vector<128x384xbf16>
    %cst = arith.constant dense<0.000000e+00> : vector<16x384xf32>
    %4 = tpu.matmul %0, %3, %cst {dimension_numbers = #tpu.dot_dimension_numbers<[1], [0], [0], [1], [0, 0, 1, 1], [], []>} : vector<16x128xbf16>, vector<128x384xbf16>, vector<16x384xf32> -> vector<16x384xf32>
    %c0_5 = arith.constant 0 : index
    %c0_6 = arith.constant 0 : index
    %5 = vector.load %arg4[%c0_5, %c0_6] : memref<1x384xf32, #tpu.memory_space<vmem>>, vector<1x384xf32>
    %6 = vector.broadcast %5 : vector<1x384xf32> to vector<16x384xf32>
    %7 = arith.addf %4, %6 : vector<16x384xf32>
    %c0_7 = arith.constant 0 : index
    %c0_8 = arith.constant 0 : index
    %8 = vector.load %arg5[%c0_7, %c0_8] : memref<128x256xbf16, #tpu.memory_space<vmem>>, vector<128x256xbf16>
    %cst_9 = arith.constant dense<0.000000e+00> : vector<16x256xf32>
    %9 = tpu.matmul %1, %8, %cst_9 {dimension_numbers = #tpu.dot_dimension_numbers<[1], [0], [0], [1], [0, 0, 1, 1], [], []>} : vector<16x128xbf16>, vector<128x256xbf16>, vector<16x256xf32> -> vector<16x256xf32>
    %10 = vector.extract_strided_slice %7 {offsets = [0, 0], sizes = [16, 128], strides = [1, 1]} : vector<16x384xf32> to vector<16x128xf32>
    %11 = vector.extract_strided_slice %9 {offsets = [0, 0], sizes = [16, 128], strides = [1, 1]} : vector<16x256xf32> to vector<16x128xf32>
    %12 = arith.addf %10, %11 : vector<16x128xf32>
    %13 = arith.negf %12 : vector<16x128xf32>
    %14 = math.exp %13 : vector<16x128xf32>
    %cst_10 = arith.constant 1.000000e+00 : f32
    %15 = vector.broadcast %cst_10 : f32 to vector<16x128xf32>
    %16 = arith.addf %15, %14 : vector<16x128xf32>
    %17 = arith.divf %15, %16 : vector<16x128xf32>
    %18 = vector.extract_strided_slice %7 {offsets = [0, 128], sizes = [16, 128], strides = [1, 1]} : vector<16x384xf32> to vector<16x128xf32>
    %19 = vector.extract_strided_slice %9 {offsets = [0, 128], sizes = [16, 128], strides = [1, 1]} : vector<16x256xf32> to vector<16x128xf32>
    %20 = arith.addf %18, %19 : vector<16x128xf32>
    %21 = arith.negf %20 : vector<16x128xf32>
    %22 = math.exp %21 : vector<16x128xf32>
    %cst_11 = arith.constant 1.000000e+00 : f32
    %23 = vector.broadcast %cst_11 : f32 to vector<16x128xf32>
    %24 = arith.addf %23, %22 : vector<16x128xf32>
    %25 = arith.divf %23, %24 : vector<16x128xf32>
    %26 = arith.mulf %25, %2 : vector<16x128xf32>
    %27 = arith.truncf %26 : vector<16x128xf32> to vector<16x128xbf16>
    %28 = vector.extract_strided_slice %7 {offsets = [0, 256], sizes = [16, 128], strides = [1, 1]} : vector<16x384xf32> to vector<16x128xf32>
    %c0_12 = arith.constant 0 : index
    %c0_13 = arith.constant 0 : index
    %29 = vector.load %arg6[%c0_12, %c0_13] : memref<128x128xbf16, #tpu.memory_space<vmem>>, vector<128x128xbf16>
    %cst_14 = arith.constant dense<0.000000e+00> : vector<16x128xf32>
    %30 = tpu.matmul %27, %29, %cst_14 {dimension_numbers = #tpu.dot_dimension_numbers<[1], [0], [0], [1], [0, 0, 1, 1], [], []>} : vector<16x128xbf16>, vector<128x128xbf16>, vector<16x128xf32> -> vector<16x128xf32>
    %31 = arith.addf %28, %30 : vector<16x128xf32>
    %32 = math.tanh %31 : vector<16x128xf32>
    %33 = arith.subf %2, %32 : vector<16x128xf32>
    %34 = arith.mulf %17, %33 : vector<16x128xf32>
    %35 = arith.addf %32, %34 : vector<16x128xf32>
    %c0_15 = arith.constant 0 : index
    %c0_16 = arith.constant 0 : index
    %36 = vector.load %arg7[%c0_15, %c0_16] : memref<16x128xf32, #tpu.memory_space<vmem>>, vector<16x128xf32>
    tpu.vector_store %arg7[%c0_15, %c0_16], %35 {strides = array<i32>} : memref<16x128xf32, #tpu.memory_space<vmem>>, vector<16x128xf32>,
    return
  }
  func.func @transform_0(%arg0: i32) -> (i32, i32) {
    %c0_i32 = arith.constant 0 : i32
    %c0_i32_0 = arith.constant 0 : i32
    return %arg0, %c0_i32 : i32, i32
  }
  func.func @transform_1(%arg0: i32) -> (i32, i32) {
    %c0_i32 = arith.constant 0 : i32
    %c0_i32_0 = arith.constant 0 : i32
    return %arg0, %c0_i32 : i32, i32
  }
  func.func @transform_2(%arg0: i32) -> (i32, i32) {
    %c0_i32 = arith.constant 0 : i32
    %c0_i32_0 = arith.constant 0 : i32
    %c0_i32_1 = arith.constant 0 : i32
    return %c0_i32, %c0_i32_0 : i32, i32
  }
  func.func @transform_3(%arg0: i32) -> (i32, i32) {
    %c0_i32 = arith.constant 0 : i32
    %c0_i32_0 = arith.constant 0 : i32
    %c0_i32_1 = arith.constant 0 : i32
    return %c0_i32, %c0_i32_0 : i32, i32
  }
  func.func @transform_4(%arg0: i32) -> (i32, i32) {
    %c0_i32 = arith.constant 0 : i32
    %c0_i32_0 = arith.constant 0 : i32
    %c0_i32_1 = arith.constant 0 : i32
    return %c0_i32, %c0_i32_0 : i32, i32
  }
  func.func @transform_5(%arg0: i32) -> (i32, i32) {
    %c0_i32 = arith.constant 0 : i32
    %c0_i32_0 = arith.constant 0 : i32
    %c0_i32_1 = arith.constant 0 : i32
    return %c0_i32, %c0_i32_0 : i32, i32
  }
  func.func @transform_6(%arg0: i32) -> (i32, i32) {
    %c0_i32 = arith.constant 0 : i32
    %c0_i32_0 = arith.constant 0 : i32
    return %arg0, %c0_i32 : i32, i32
  }
}

module attributes {stable_mosaic.version = 11 : i64} {
  func.func @gru_cell_kernel(%arg0: i32, %arg1: memref<16x128xbf16, #tpu.memory_space<vmem>>, %arg2: memref<16x128xbf16, #tpu.memory_space<vmem>>, %arg3: memref<128x384xbf16, #tpu.memory_space<vmem>>, %arg4: memref<1x384xf32, #tpu.memory_space<vmem>>, %arg5: memref<128x256xbf16, #tpu.memory_space<vmem>>, %arg6: memref<128x128xbf16, #tpu.memory_space<vmem>>, %arg7: memref<16x128xf32, #tpu.memory_space<vmem>>) attributes {dimension_semantics = [#tpu.dimension_semantics<parallel>], iteration_bounds = array<i64: 1>, scalar_prefetch = 0 : i64, scratch_operands = 0 : i64, tpu.core_type = #tpu.core_type<tc>, window_params = [{transform_indices = @transform_0, window_bounds = array<i64: 16, 128>}, {transform_indices = @transform_1, window_bounds = array<i64: 16, 128>}, {pipeline_mode = #tpu.pipeline_mode<synchronous>, transform_indices = @transform_2, window_bounds = array<i64: 128, 384>}, {pipeline_mode = #tpu.pipeline_mode<synchronous>, transform_indices = @transform_3, window_bounds = array<i64: 1, 384>}, {pipeline_mode = #tpu.pipeline_mode<synchronous>, transform_indices = @transform_4, window_bounds = array<i64: 128, 256>}, {pipeline_mode = #tpu.pipeline_mode<synchronous>, transform_indices = @transform_5, window_bounds = array<i64: 128, 128>}, {transform_indices = @transform_6, window_bounds = array<i64: 16, 128>}]} {
    %c0 = arith.constant 0 : index
    %c0_0 = arith.constant 0 : index
    %0 = vector.load %arg1[%c0, %c0_0] : memref<16x128xbf16, #tpu.memory_space<vmem>>, vector<16x128xbf16>
    %c0_1 = arith.constant 0 : index
    %c0_2 = arith.constant 0 : index
    %1 = vector.load %arg2[%c0_1, %c0_2] : memref<16x128xbf16, #tpu.memory_space<vmem>>, vector<16x128xbf16>
    %2 = arith.extf %1 : vector<16x128xbf16> to vector<16x128xf32>
    %c0_3 = arith.constant 0 : index
    %c0_4 = arith.constant 0 : index
    %3 = vector.load %arg3[%c0_3, %c0_4] : memref<128x384xbf16, #tpu.memory_space<vmem>>, vector<128x384xbf16>
    %cst = arith.constant dense<0.000000e+00> : vector<16x384xf32>
    %4 = tpu.matmul %0, %3, %cst {dimension_numbers = #tpu.dot_dimension_numbers<[1], [0], [0], [1], [0, 0, 1, 1], [], []>} : vector<16x128xbf16>, vector<128x384xbf16>, vector<16x384xf32> -> vector<16x384xf32>
    %c0_5 = arith.constant 0 : index
    %c0_6 = arith.constant 0 : index
    %5 = vector.load %arg4[%c0_5, %c0_6] : memref<1x384xf32, #tpu.memory_space<vmem>>, vector<1x384xf32>
    %6 = vector.broadcast %5 : vector<1x384xf32> to vector<16x384xf32>
    %7 = arith.addf %4, %6 : vector<16x384xf32>
    %c0_7 = arith.constant 0 : index
    %c0_8 = arith.constant 0 : index
    %8 = vector.load %arg5[%c0_7, %c0_8] : memref<128x256xbf16, #tpu.memory_space<vmem>>, vector<128x256xbf16>
    %cst_9 = arith.constant dense<0.000000e+00> : vector<16x256xf32>
    %9 = tpu.matmul %1, %8, %cst_9 {dimension_numbers = #tpu.dot_dimension_numbers<[1], [0], [0], [1], [0, 0, 1, 1], [], []>} : vector<16x128xbf16>, vector<128x256xbf16>, vector<16x256xf32> -> vector<16x256xf32>
    %10 = vector.extract_strided_slice %7 {offsets = [0, 0], sizes = [16, 128], strides = [1, 1]} : vector<16x384xf32> to vector<16x128xf32>
    %11 = vector.extract_strided_slice %9 {offsets = [0, 0], sizes = [16, 128], strides = [1, 1]} : vector<16x256xf32> to vector<16x128xf32>
    %12 = arith.addf %10, %11 : vector<16x128xf32>
    %13 = arith.negf %12 : vector<16x128xf32>
    %14 = math.exp %13 : vector<16x128xf32>
    %cst_10 = arith.constant 1.000000e+00 : f32
    %15 = vector.broadcast %cst_10 : f32 to vector<16x128xf32>
    %16 = arith.addf %15, %14 : vector<16x128xf32>
    %17 = arith.divf %15, %16 : vector<16x128xf32>
    %18 = vector.extract_strided_slice %7 {offsets = [0, 128], sizes = [16, 128], strides = [1, 1]} : vector<16x384xf32> to vector<16x128xf32>
    %19 = vector.extract_strided_slice %9 {offsets = [0, 128], sizes = [16, 128], strides = [1, 1]} : vector<16x256xf32> to vector<16x128xf32>
    %20 = arith.addf %18, %19 : vector<16x128xf32>
    %21 = arith.negf %20 : vector<16x128xf32>
    %22 = math.exp %21 : vector<16x128xf32>
    %cst_11 = arith.constant 1.000000e+00 : f32
    %23 = vector.broadcast %cst_11 : f32 to vector<16x128xf32>
    %24 = arith.addf %23, %22 : vector<16x128xf32>
    %25 = arith.divf %23, %24 : vector<16x128xf32>
    %26 = arith.mulf %25, %2 : vector<16x128xf32>
    %27 = arith.truncf %26 : vector<16x128xf32> to vector<16x128xbf16>
    %28 = vector.extract_strided_slice %7 {offsets = [0, 256], sizes = [16, 128], strides = [1, 1]} : vector<16x384xf32> to vector<16x128xf32>
    %c0_12 = arith.constant 0 : index
    %c0_13 = arith.constant 0 : index
    %29 = vector.load %arg6[%c0_12, %c0_13] : memref<128x128xbf16, #tpu.memory_space<vmem>>, vector<128x128xbf16>
    %cst_14 = arith.constant dense<0.000000e+00> : vector<16x128xf32>
    %30 = tpu.matmul %27, %29, %cst_14 {dimension_numbers = #tpu.dot_dimension_numbers<[1], [0], [0], [1], [0, 0, 1, 1], [], []>} : vector<16x128xbf16>, vector<128x128xbf16>, vector<16x128xf32> -> vector<16x128xf32>
    %31 = arith.addf %28, %30 : vector<16x128xf32>
    %32 = math.tanh %31 : vector<16x128xf32>
    %33 = arith.subf %2, %32 : vector<16x128xf32>
    %34 = arith.mulf %17, %33 : vector<16x128xf32>
    %35 = arith.addf %32, %34 : vector<16x128xf32>
    %c0_15 = arith.constant 0 : index
    %c0_16 = arith.constant 0 : index
    %36 = vector.load %arg7[%c0_15, %c0_16] : memref<16x128xf32, #tpu.memory_space<vmem>>, vector<16x128xf32>
    tpu.vector_store %arg7[%c0_15, %c0_16], %35 {strides = array<i32>} : memref<16x128xf32, #tpu.memory_space<vmem>>, vector<16x128xf32>,
    return
  }
  func.func @transform_0(%arg0: i32) -> (i32, i32) {
    %c0_i32 = arith.constant 0 : i32
    %c0_i32_0 = arith.constant 0 : i32
    return %arg0, %c0_i32 : i32, i32
  }
  func.func @transform_1(%arg0: i32) -> (i32, i32) {
    %c0_i32 = arith.constant 0 : i32
    %c0_i32_0 = arith.constant 0 : i32
    return %arg0, %c0_i32 : i32, i32
  }
  func.func @transform_2(%arg0: i32) -> (i32, i32) {
    %c0_i32 = arith.constant 0 : i32
    %c0_i32_0 = arith.constant 0 : i32
    %c0_i32_1 = arith.constant 0 : i32
    return %c0_i32, %c0_i32_0 : i32, i32
  }
  func.func @transform_3(%arg0: i32) -> (i32, i32) {
    %c0_i32 = arith.constant 0 : i32
    %c0_i32_0 = arith.constant 0 : i32
    %c0_i32_1 = arith.constant 0 : i32
    return %c0_i32, %c0_i32_0 : i32, i32
  }
  func.func @transform_4(%arg0: i32) -> (i32, i32) {
    %c0_i32 = arith.constant 0 : i32
    %c0_i32_0 = arith.constant 0 : i32
    %c0_i32_1 = arith.constant 0 : i32
    return %c0_i32, %c0_i32_0 : i32, i32
  }
  func.func @transform_5(%arg0: i32) -> (i32, i32) {
    %c0_i32 = arith.constant 0 : i32
    %c0_i32_0 = arith.constant 0 : i32
    %c0_i32_1 = arith.constant 0 : i32
    return %c0_i32, %c0_i32_0 : i32, i32
  }
  func.func @transform_6(%arg0: i32) -> (i32, i32) {
    %c0_i32 = arith.constant 0 : i32
    %c0_i32_0 = arith.constant 0 : i32
    return %arg0, %c0_i32 : i32, i32
  }
}

</mosaic_0001>

<bundles_post_ra>
// kernel: tpu_custom_call.1
= control target key start
LH: loop header
LB: loop body
LE: loop exit
PB: predicated region body
PF: predicated region fallthrough
CT: control target
= control target key end

     0   :  { %11 = vsyncpa [#allocation3], 0  ;;  %s1223_s0 = inlined_call_operand.hbm [shape: bf16[16,128], index: 0, kind: input, shape index: {}]   ;;  %s1224_s1 = inlined_call_operand.hbm [shape: bf16[16,128], index: 1, kind: input, shape index: {}]   ;;  %s1225_s2 = inlined_call_operand.hbm [shape: bf16[128,384], index: 2, kind: input, shape index: {}]   ;;  %s1226_s3 = inlined_call_operand.vmem [shape: f32[1,384], index: 3, kind: input, shape index: {}]   ;;  %s1227_s4 = inlined_call_operand.hbm [shape: bf16[128,256], index: 4, kind: input, shape index: {}]   ;;  %s1228_s5 = inlined_call_operand.hbm [shape: bf16[128,128], index: 5, kind: input, shape index: {}]   ;;  %s1229_s6 = inlined_call_operand.hbm [shape: f32[16,128], index: 6, kind: output, shape index: {}]  }
   0x1   :  { %12 = vsyncpa [#allocation6], 0 }
   0x2   :  { %13 = vsyncpa [#allocation9], 0 }
   0x3   :  { %14 = vsyncpa [#allocation4], 0  ;;  %s1046_s21 = smov [#allocation5]   ;;  %s1047_s23 = smov [#allocation8]  }
   0x4   :  { %s32_s22 = sshll.u32 %s1046_s21, 4  ;;  %s58_s24 = sshll.u32 %s1047_s23, 4  ;;  %s33_s22 = int_to_ptr.vmem [resolvable:$true] %s32_s22  ;;  %s1096_s24 = int_to_ptr.vmem [resolvable:$true] %s58_s24 }
   0x5   :  { %s906_s27 = scalar_lea.hbm %s1224_s1, 128 }
   0x6   :  { %p907_p0 = scmp.ne.s32.totalorder %s1224_s1, %s906_s27  ;;  %p910_p1 = scmp.lt.u32.totalorder %s906_s27, %s1224_s1 }
   0x8   :  { %p912_p2 = pnand %p910_p1, %p907_p0 }
   0xa   :  { %915 = shalt.err (!%p912_p2)
}
   0xb   :  { %s916_s8 = scalar_lea.vmem %s33_s22, 128  ;;  %p921_p4 = scmp.lt.s32.totalorder %s33_s22, %s33_s22 }
   0xc   :  { %p917_p3 = scmp.ne.s32.totalorder %s33_s22, %s916_s8  ;;  %p922_p5 = scmp.lt.s32.totalorder %s916_s8, %s916_s8 }
   0xe   :  { %p923_p6 = por %p922_p5, %p921_p4 }
  0x10   :  { %p924_p7 = pnand %p923_p6, %p917_p3 }
  0x12   :  { %927 = shalt.err (!%p924_p7)
}
  0x13   :  { %s1048_s9 = smov 64   ;;  %s1049_s10 = smov 4  }
  0x14   :  { %38 = dma.hbm_to_vmem [thread:$0]  %s1224_s1, 128, %s33_s22, [#allocation6], %s1048_s9, %s1048_s9, %s1049_s10  }
  0x15   :  { %s928_s15 = scalar_lea.hbm %s1227_s4, 2048 }
  0x16   :  { %p929_p8 = scmp.ne.s32.totalorder %s1227_s4, %s928_s15  ;;  %p932_p9 = scmp.lt.u32.totalorder %s928_s15, %s1227_s4 }
  0x18   :  { %p934_p10 = pnand %p932_p9, %p929_p8 }
  0x1a   :  { %937 = shalt.err (!%p934_p10)
}
  0x1b   :  { %s938_s20 = scalar_lea.vmem %s1096_s24, 2048  ;;  %p943_p12 = scmp.lt.s32.totalorder %s1096_s24, %s1096_s24 }
  0x1c   :  { %p939_p11 = scmp.ne.s32.totalorder %s1096_s24, %s938_s20  ;;  %p944_p13 = scmp.lt.s32.totalorder %s938_s20, %s938_s20 }
  0x1e   :  { %p945_p0 = por %p944_p13, %p943_p12 }
  0x20   :  { %p946_p1 = pnand %p945_p0, %p939_p11 }
  0x22   :  { %949 = shalt.err (!%p946_p1)
}
  0x23   :  { %s1050_s1 = smov 128   ;;  %s1051_s21 = smov 8  }
  0x24   :  { %64 = dma.hbm_to_vmem [thread:$0]  %s1227_s4, 2048, %s1096_s24, [#allocation9], %s1050_s1, %s1050_s1, %s1051_s21  }
  0x25   :  { %s1052_s25 = smov [#allocation2]   ;;  %s1053_s27 = smov [#allocation7]  }
  0x26   :  { %s20_s26 = sshll.u32 %s1052_s25, 4  ;;  %s44_s28 = sshll.u32 %s1053_s27, 4  ;;  %s21_s26 = int_to_ptr.vmem [resolvable:$true] %s20_s26  ;;  %s1133_s28 = int_to_ptr.vmem [resolvable:$true] %s44_s28 }
  0x27   :  { %s950_s7 = scalar_lea.hbm %s1223_s0, 128 }
  0x28   :  { %p951_p2 = scmp.ne.s32.totalorder %s1223_s0, %s950_s7  ;;  %p954_p3 = scmp.lt.u32.totalorder %s950_s7, %s1223_s0 }
  0x2a   :  { %p956_p4 = pnand %p954_p3, %p951_p2 }
  0x2c   :  { %959 = shalt.err (!%p956_p4)
}
  0x2d   :  { %s960_s4 = scalar_lea.vmem %s21_s26, 128  ;;  %p965_p6 = scmp.lt.s32.totalorder %s21_s26, %s21_s26 }
  0x2e   :  { %p961_p5 = scmp.ne.s32.totalorder %s21_s26, %s960_s4  ;;  %p966_p7 = scmp.lt.s32.totalorder %s960_s4, %s960_s4 }
  0x30   :  { %p967_p8 = por %p966_p7, %p965_p6 }
  0x32   :  { %p968_p9 = pnand %p967_p8, %p961_p5 }
  0x34   :  { %971 = shalt.err (!%p968_p9)
}
  0x35   :  { %26 = dma.hbm_to_vmem [thread:$0]  %s1223_s0, 128, %s21_s26, [#allocation3], %s1048_s9, %s1048_s9, %s1049_s10  }
  0x36   :  { %s972_s17 = scalar_lea.hbm %s1225_s2, 3072 }
  0x37   :  { %p973_p10 = scmp.ne.s32.totalorder %s1225_s2, %s972_s17  ;;  %p976_p11 = scmp.lt.u32.totalorder %s972_s17, %s1225_s2 }
  0x39   :  { %p978_p12 = pnand %p976_p11, %p973_p10 }
  0x3b   :  { %981 = shalt.err (!%p978_p12)
}
  0x3c   :  { %s982_s23 = scalar_lea.vmem %s1133_s28, 3072  ;;  %p987_p0 = scmp.lt.s32.totalorder %s1133_s28, %s1133_s28 }
  0x3d   :  { %p983_p13 = scmp.ne.s32.totalorder %s1133_s28, %s982_s23  ;;  %p988_p1 = scmp.lt.s32.totalorder %s982_s23, %s982_s23 }
  0x3f   :  { %p989_p2 = por %p988_p1, %p987_p0 }
  0x41   :  { %p990_p3 = pnand %p989_p2, %p983_p13 }
  0x43   :  { %993 = shalt.err (!%p990_p3)
}
  0x44   :  { %s1054_s0 = smov 192   ;;  %s1055_s25 = smov 12  }
  0x45   :  { %50 = dma.hbm_to_vmem [thread:$0]  %s1225_s2, 3072, %s1133_s28, [#allocation6], %s1054_s0, %s1054_s0, %s1055_s25  }
  0x46   :  { %s1056_s29 = smov [#allocation10]   ;;  %s994_s11 = scalar_lea.hbm %s1228_s5, 1024 }
  0x47   :  { %s70_s30 = sshll.u32 %s1056_s29, 4  ;;  %p995_p4 = scmp.ne.s32.totalorder %s1228_s5, %s994_s11  ;;  %s71_s30 = int_to_ptr.vmem [resolvable:$true] %s70_s30 }
  0x48   :  { %p998_p5 = scmp.lt.u32.totalorder %s994_s11, %s1228_s5 }
  0x4a   :  { %p1000_p6 = pnand %p998_p5, %p995_p4 }
  0x4c   :  { %1003 = shalt.err (!%p1000_p6)
}
  0x4d   :  { %s1004_s14 = scalar_lea.vmem %s71_s30, 1024  ;;  %p1009_p8 = scmp.lt.s32.totalorder %s71_s30, %s71_s30 }
  0x4e   :  { %p1005_p7 = scmp.ne.s32.totalorder %s71_s30, %s1004_s14  ;;  %p1010_p9 = scmp.lt.s32.totalorder %s1004_s14, %s1004_s14 }
  0x50   :  { %p1011_p10 = por %p1010_p9, %p1009_p8 }
  0x52   :  { %p1012_p11 = pnand %p1011_p10, %p1005_p7 }
  0x54   :  { %1015 = shalt.err (!%p1012_p11)
}
  0x55   :  { %76 = dma.hbm_to_vmem [thread:$0]  %s1228_s5, 1024, %s71_s30, [#allocation9], %s1048_s9, %s1048_s9, %s1049_s10  }
  0x56   :  { %1038 = dma.done.wait [#allocation3], 128  }
  0x57   :  { %1039 = vsyncadd [#allocation3], 4294967168 }
  0x58   :  { %1040 = dma.done.wait [#allocation6], 3200  }
  0x59   :  { %1041 = vsyncadd [#allocation6], 4294964096 }
  0x5a   :  { %1042 = dma.done.wait [#allocation9], 3072  }
  0x5b   :  { %1043 = vsyncadd [#allocation9], 4294964224  ;;  %v1057_v0 = vmov 0   ;;  %v1058_v1 = vmov 0.0   ;;  %v819_v2 = vld [vmem:[#allocation7 + $0x4] ss:$12 sps:$4 sm:$0xff]   ;;  %v133_v52 = vlaneseq }
  0x5c   :  { %314 = vmatprep.mubr.bf16.mxu0 %v1057_v0  ;;  %750 = vmatprep.subr.bf16.mxu1 %v1058_v1  ;;  %v821_v3 = vld [vmem:[#allocation7] ss:$12 sps:$4 sm:$0xff]   ;;  %v822_v4 = vld [vmem:[#allocation7 + $0x1c] ss:$12 sps:$4 sm:$0xff]   ;;  %v824_v5 = vld [vmem:[#allocation7 + $0x18] ss:$12 sps:$4 sm:$0xff]  }
  0x5d   :  { %282 = vmatprep.subr.bf16.mxu0 %v819_v2  ;;  %v825_v6 = vld [vmem:[#allocation7 + $0x34] ss:$12 sps:$4 sm:$0xff]   ;;  %v827_v7 = vld [vmem:[#allocation7 + $0x30] ss:$12 sps:$4 sm:$0xff]   ;;  %v828_v8 = vld [vmem:[#allocation7 + $0x4c] ss:$12 sps:$4 sm:$0xff]  }
  0x5e   :  { %283 = vmatpush1.bf16.msra.mxu0 %v821_v3  ;;  %v830_v9 = vld [vmem:[#allocation7 + $0x48] ss:$12 sps:$4 sm:$0xff]   ;;  %v831_v10 = vld [vmem:[#allocation7 + $0x64] ss:$12 sps:$4 sm:$0xff]   ;;  %v833_v11 = vld [vmem:[#allocation7 + $0x60] ss:$12 sps:$4 sm:$0xff]  }
  0x5f   :  { %284 = vmatprep.subr.bf16.mxu0 %v822_v4  ;;  %v834_v12 = vld [vmem:[#allocation7 + $0x7c] ss:$12 sps:$4 sm:$0xff]   ;;  %v836_v13 = vld [vmem:[#allocation7 + $0x78] ss:$12 sps:$4 sm:$0xff]   ;;  %v837_v14 = vld [vmem:[#allocation7 + $0x94] ss:$12 sps:$4 sm:$0xff]  }
  0x60   :  { %v839_v15 = vld [vmem:[#allocation7 + $0x90] ss:$12 sps:$4 sm:$0xff]   ;;  %v869_v16 = vld [vmem:[#allocation7 + $0x8] ss:$12 sps:$4 sm:$0xff]   ;;  %v840_v17 = vld [vmem:[#allocation7 + $0xac] ss:$12 sps:$4 sm:$0xff]  }
  0x61   :  { %751 = vmatpush3.bf16.msra.mxu1 %v869_v16  ;;  %v870_v18 = vld [vmem:[#allocation7 + $0x20] ss:$12 sps:$4 sm:$0xff]   ;;  %v842_v19 = vld [vmem:[#allocation7 + $0xa8] ss:$12 sps:$4 sm:$0xff]   ;;  %v871_v23 = vld [vmem:[#allocation7 + $0x38] ss:$12 sps:$4 sm:$0xff]  }
  0x62   :  { %285 = vmatpush1.bf16.msra.mxu0 %v824_v5  ;;  %752 = vmatprep.subr.bf16.mxu1 %v1058_v1  ;;  %v845_v20 = vld [vmem:[#allocation8 + $0x4] ss:$8 sps:$4 sm:$0xff]   ;;  %v843_v21 = vld [vmem:[#allocation8] ss:$8 sps:$4 sm:$0xff]   ;;  %v846_v22 = vld [vmem:[#allocation2] sm:$0xff]   ;;  %vm1059_vm0 = vmmov 0  }
  0x63   :  { %286 = vmatprep.subr.bf16.mxu0 %v825_v6  ;;  %v849_v24 = vld [vmem:[#allocation8 + $0x14] ss:$8 sps:$4 sm:$0xff]   ;;  %v847_v26 = vld [vmem:[#allocation8 + $0x10] ss:$8 sps:$4 sm:$0xff]   ;;  %v852_v27 = vld [vmem:[#allocation8 + $0x24] ss:$8 sps:$4 sm:$0xff]   ;;  %766 = vmatprep.mubr.msk.bf16.mxu1 %vm1059_vm0, %v1058_v1 }
  0x64   :  { %v872_v25 = vld [vmem:[#allocation7 + $0x50] ss:$12 sps:$4 sm:$0xff]   ;;  %v873_v28 = vld [vmem:[#allocation7 + $0x68] ss:$12 sps:$4 sm:$0xff]   ;;  %v874_v31 = vld [vmem:[#allocation7 + $0x80] ss:$12 sps:$4 sm:$0xff]  }
  0x65   :  { %753 = vmatpush3.bf16.msra.mxu1 %v870_v18  ;;  %v850_v29 = vld [vmem:[#allocation8 + $0x20] ss:$8 sps:$4 sm:$0xff]   ;;  %v855_v30 = vld [vmem:[#allocation8 + $0x34] ss:$8 sps:$4 sm:$0xff]   ;;  %v853_v32 = vld [vmem:[#allocation8 + $0x30] ss:$8 sps:$4 sm:$0xff]  }
  0x66   :  { %287 = vmatpush1.bf16.msra.mxu0 %v827_v7  ;;  %754 = vmatprep.subr.bf16.mxu1 %v1058_v1  ;;  %v858_v33 = vld [vmem:[#allocation8 + $0x44] ss:$8 sps:$4 sm:$0xff]   ;;  %v856_v35 = vld [vmem:[#allocation8 + $0x40] ss:$8 sps:$4 sm:$0xff]   ;;  %v861_v36 = vld [vmem:[#allocation8 + $0x54] ss:$8 sps:$4 sm:$0xff]  }
  0x67   :  { %288 = vmatprep.subr.bf16.mxu0 %v828_v8  ;;  %v875_v34 = vld [vmem:[#allocation7 + $0x98] ss:$12 sps:$4 sm:$0xff]   ;;  %v862_v39 = vld [vmem:[#allocation8 + $0x60] ss:$8 sps:$4 sm:$0xff]   ;;  %v867_v40 = vld [vmem:[#allocation8 + $0x74] ss:$8 sps:$4 sm:$0xff]  }
  0x68   :  { %v859_v37 = vld [vmem:[#allocation8 + $0x50] ss:$8 sps:$4 sm:$0xff]   ;;  %v864_v38 = vld [vmem:[#allocation8 + $0x64] ss:$8 sps:$4 sm:$0xff]   ;;  %v134_v53 = vshrl.u32 %v133_v52, 7 }
  0x69   :  { %755 = vmatpush3.bf16.msra.mxu1 %v871_v23  ;;  %v865_v41 = vld [vmem:[#allocation8 + $0x70] ss:$8 sps:$4 sm:$0xff]   ;;  %v877_v44 = vld [vmem:[#allocation10] sm:$0xff]   ;;  %v878_v45 = vld [vmem:[#allocation10 + $0x8] sm:$0xff]  }
  0x6a   :  { %289 = vmatpush1.bf16.msra.mxu0 %v830_v9  ;;  %756 = vmatprep.subr.bf16.mxu1 %v1058_v1  ;;  %v1190_v42 = vld [vmem:[#allocation5] sm:$0xff]   ;;  %v879_v46 = vld [vmem:[#allocation10 + $0x10] sm:$0xff]   ;;  %v881_v48 = vld [vmem:[#allocation10 + $0x20] sm:$0xff]   ;;  %v139_v54 = vsub.s32 1, %v134_v53  ;;  %v143_v18 = vsub.s32 2, %v134_v53 }
  0x6b   :  { %290 = vmatprep.subr.bf16.mxu0 %v831_v10  ;;  %v876_v43 = vld [vmem:[#allocation7 + $0xb0] ss:$12 sps:$4 sm:$0xff]   ;;  %v882_v49 = vld [vmem:[#allocation10 + $0x28] sm:$0xff]   ;;  %v97_v5 = vunpack.c.l.bf16 %v1190_v42  ;;  %v98_v6 = vunpack.c.h.bf16 %v1190_v42 }
  0x6c   :  { %v880_v47 = vld [vmem:[#allocation10 + $0x18] sm:$0xff]   ;;  %v883_v50 = vld [vmem:[#allocation10 + $0x30] sm:$0xff]  }
  0x6d   :  { %757 = vmatpush3.bf16.msra.mxu1 %v872_v25  ;;  %v884_v51 = vld [vmem:[#allocation10 + $0x38] sm:$0xff]   ;;  %v131_v55 = vld [vmem:[%s1226_s3] sm:$0x7]  ;;  %s1060_s3 = smov [#allocation11]  }
  0x6e   :  { %291 = vmatpush1.bf16.msra.mxu0 %v833_v11  ;;  %758 = vmatprep.subr.bf16.mxu1 %v1058_v1  ;;  %v140_v56 = vrot.slane %v131_v55, %v139_v54  ;;  %s664_s10 = sshll.u32 %s1060_s3, 4  ;;  %s665_s10 = int_to_ptr.vmem [resolvable:$true] %s664_s10 }
  0x6f   :  { %292 = vmatprep.subr.bf16.mxu0 %v834_v12  ;;  %v135_v12 = vsub.s32 0, %v134_v53  ;;  %s1016_s15 = scalar_lea.vmem %s665_s10, 256  ;;  %p1021_p13 = scmp.lt.s32.totalorder %s665_s10, %s665_s10 }
  0x70   :  { %p1017_p12 = scmp.ne.s32.totalorder %s665_s10, %s1016_s15  ;;  %p1022_p0 = scmp.lt.s32.totalorder %s1016_s15, %s1016_s15 }
  0x71   :  { %759 = vmatpush3.bf16.msra.mxu1 %v873_v28 }
  0x72   :  { %293 = vmatpush1.bf16.msra.mxu0 %v836_v13  ;;  %760 = vmatprep.subr.bf16.mxu1 %v1058_v1  ;;  %v136_v13 = vrot.slane %v131_v55, %v135_v12  ;;  %p1023_p1 = por %p1022_p0, %p1021_p13 }
  0x73   :  { %294 = vmatprep.subr.bf16.mxu0 %v837_v14 }
  0x74   :  { %p1024_p2 = pnand %p1023_p1, %p1017_p12 }
  0x75   :  { %761 = vmatpush3.bf16.msra.mxu1 %v874_v31 }
  0x76   :  { %295 = vmatpush1.bf16.msra.mxu0 %v839_v15  ;;  %762 = vmatprep.subr.bf16.mxu1 %v1058_v1 }
  0x77   :  { %296 = vmatprep.subr.bf16.mxu0 %v840_v17 }
  0x79   :  { %763 = vmatpush3.bf16.msra.mxu1 %v875_v34 }
  0x7a   :  { %297 = vmatpush1.bf16.msra.mxu0 %v842_v19  ;;  %764 = vmatprep.subr.bf16.mxu1 %v1058_v1 }
  0x7b   :  { %468 = vmatprep.subr.bf16.mxu0 %v845_v20  ;;  %v144_v20 = vrot.slane %v131_v55, %v143_v18 }
  0x7d   :  { %315 = vmatmul.mubr.bf16.vlgmr.msra.gmra.mrb[0].mxu0 %v846_v22  ;;  %765 = vmatpush3.bf16.msra.mxu1 %v876_v43 }
  0x7e   :  { %469 = vmatpush1.bf16.msra.mxu0 %v843_v21  ;;  %500 = vmatprep.mubr.bf16.mxu0 %v1057_v0 }
  0x7f   :  { %470 = vmatprep.subr.bf16.mxu0 %v849_v24  ;;  %770 = vmatprep.subr.bf16.mxu1 %v1058_v1 }
  0x80   :  { %767 = vmatmul.mubr.bf16.vlgmr.msra.gmra.mrb[0].mxu1 %v846_v22 }
  0x81   :  { %771 = vmatpush3.bf16.msra.mxu1 %v877_v44  ;;  %786 = vmatprep.mubr.msk.bf16.mxu1 %vm1059_vm0, %v1058_v1 }
  0x82   :  { %471 = vmatpush1.bf16.msra.mxu0 %v847_v26  ;;  %772 = vmatprep.subr.bf16.mxu1 %v1058_v1 }
  0x83   :  { %472 = vmatprep.subr.bf16.mxu0 %v852_v27 }
  0x85   :  { %773 = vmatpush3.bf16.msra.mxu1 %v878_v45 }
  0x86   :  { %473 = vmatpush1.bf16.msra.mxu0 %v850_v29  ;;  %774 = vmatprep.subr.bf16.mxu1 %v1058_v1 }
  0x87   :  { %474 = vmatprep.subr.bf16.mxu0 %v855_v30 }
  0x89   :  { %775 = vmatpush3.bf16.msra.mxu1 %v879_v46 }
  0x8a   :  { %475 = vmatpush1.bf16.msra.mxu0 %v853_v32  ;;  %776 = vmatprep.subr.bf16.mxu1 %v1058_v1 }
  0x8b   :  { %476 = vmatprep.subr.bf16.mxu0 %v858_v33 }
  0x8d   :  { %777 = vmatpush3.bf16.msra.mxu1 %v880_v47 }
  0x8e   :  { %477 = vmatpush1.bf16.msra.mxu0 %v856_v35  ;;  %778 = vmatprep.subr.bf16.mxu1 %v1058_v1 }
  0x8f   :  { %478 = vmatprep.subr.bf16.mxu0 %v861_v36 }
  0x91   :  { %779 = vmatpush3.bf16.msra.mxu1 %v881_v48 }
  0x92   :  { %479 = vmatpush1.bf16.msra.mxu0 %v859_v37  ;;  %780 = vmatprep.subr.bf16.mxu1 %v1058_v1 }
  0x93   :  { %480 = vmatprep.subr.bf16.mxu0 %v864_v38 }
  0x95   :  { %781 = vmatpush3.bf16.msra.mxu1 %v882_v49 }
  0x96   :  { %481 = vmatpush1.bf16.msra.mxu0 %v862_v39  ;;  %782 = vmatprep.subr.bf16.mxu1 %v1058_v1 }
  0x97   :  { %482 = vmatprep.subr.bf16.mxu0 %v867_v40 }
  0x99   :  { %783 = vmatpush3.bf16.msra.mxu1 %v883_v50 }
  0x9a   :  { %483 = vmatpush1.bf16.msra.mxu0 %v865_v41  ;;  %784 = vmatprep.subr.bf16.mxu1 %v1058_v1 }
  0x9d   :  { %501 = vmatmul.mubr.bf16.vlgmr.msra.gmra.mrb[0].mxu0 %v1190_v42  ;;  %785 = vmatpush3.bf16.msra.mxu1 %v884_v51 }
 0x170   :  { %v502_v57 = vpop.f32.mrb[0].mxu0 }
 0x171   :  { %v504_v58 = vpop.f32.mrb[1].mxu0  ;;  %v790_v14 = vadd.f32 %v502_v57, %v136_v13 }
 0x172   :  { %v791_v59 = vadd.f32 %v504_v58, %v140_v56  ;;  %v506_v60 = vpop.f32.mrb[2].mxu0 }
 0x173   :  { %v508_v61 = vpop.f32.mrb[3].mxu0  ;;  %v792_v15 = vadd.f32 %v506_v60, %v136_v13  ;;  %v720_v16 = vmul.f32 -1.442695, %v790_v14 }
 0x174   :  { %v722_v62 = vmul.f32 -1.442695, %v791_v59  ;;  %v793_v63 = vadd.f32 %v508_v61, %v140_v56 }
 0x175   :  { %v721_v17 = vmul.f32 -1.442695, %v792_v15 }
 0x176   :  { %886 = vpow2.f32 %v722_v62  ;;  %v723_v0 = vmul.f32 -1.442695, %v793_v63 }
 0x178   :  { %888 = vpow2.f32 %v723_v0 }
 0x180   :  { %v887_v1 = vpop.eup %886 }
 0x181   :  { %v533_v2 = vadd.f32 1.0, %v887_v1 }
 0x182   :  { %v889_v3 = vpop.eup %888 }
 0x183   :  { %890 = vrcp.f32 %v533_v2  ;;  %v534_v4 = vadd.f32 1.0, %v889_v3 }
 0x185   :  { %892 = vrcp.f32 %v534_v4 }
 0x186   :  { %894 = vpow2.f32 %v720_v16 }
 0x187   :  { %896 = vpow2.f32 %v721_v17 }
 0x18d   :  { %v891_v7 = vpop.eup %890 }
 0x18e   :  { %v539_v9 = vmul.f32 %v891_v7, %v97_v5 }
 0x18f   :  { %v893_v8 = vpop.eup %892 }
 0x190   :  { %v540_v10 = vmul.f32 %v893_v8, %v98_v6  ;;  %v895_v19 = vpop.eup %894 }
 0x191   :  { %v897_v21 = vpop.eup %896  ;;  %v519_v22 = vadd.f32 1.0, %v895_v19 }
 0x192   :  { %v541_v11 = vpack.c.bf16 %v540_v10, %v539_v9  ;;  %v520_v27 = vadd.f32 1.0, %v897_v21 }
 0x194   :  { %787 = vmatmul.mubr.bf16.vlgmr.msra.gmra.mrb[0].mxu1 %v541_v11 }
 0x267   :  { %v640_v23 = vpop.f32.mrb[0].mxu1 }
 0x268   :  { %v794_v24 = vadd.f32 %v640_v23, %v144_v20  ;;  %v788_v25 = vpop.f32.mrb[1].mxu1 }
 0x269   :  { %v643_v26 = vpop.f32.mrb[2].mxu1 }
 0x26a   :  { %898 = vtanh.f32 %v794_v24  ;;  %v795_v28 = vadd.f32 %v643_v26, %v144_v20  ;;  %v789_v29 = vpop.f32.mrb[3].mxu1 }
 0x26b   :  { %900 = vrcp.f32 %v519_v22 }
 0x26c   :  { %902 = vtanh.f32 %v795_v28 }
 0x26d   :  { %904 = vrcp.f32 %v520_v27 }
 0x274   :  { %v899_v30 = vpop.eup %898 }
 0x275   :  { %v901_v31 = vpop.eup %900  ;;  %v651_v32 = vsub.f32 %v97_v5, %v899_v30 }
 0x276   :  { %v903_v33 = vpop.eup %902 }
 0x277   :  { %v652_v34 = vsub.f32 %v98_v6, %v903_v33  ;;  %v653_v35 = vmul.f32 %v901_v31, %v651_v32  ;;  %v905_v36 = vpop.eup %904 }
 0x279   :  { %v654_v37 = vmul.f32 %v905_v36, %v652_v34  ;;  %v655_v38 = vadd.f32 %v899_v30, %v653_v35 }
 0x27b   :  { %v656_v39 = vadd.f32 %v903_v33, %v654_v37  ;;  %657 = vst [vmem:[#allocation11] sm:$0xff] %v655_v38 }
 0x27d   :  { %658 = vst [vmem:[#allocation11 + $0x8] sm:$0xff] %v656_v39 }
 0x27e   :  { %1027 = shalt.err (!%p1024_p2)
}
 0x27f   :  { %s1028_s18 = scalar_lea.hbm %s1229_s6, 256 }
 0x280   :  { %p1029_p3 = scmp.ne.s32.totalorder %s1229_s6, %s1028_s18  ;;  %p1032_p4 = scmp.lt.u32.totalorder %s1028_s18, %s1229_s6 }
 0x282   :  { %p1034_p5 = pnand %p1032_p4, %p1029_p3 }
 0x284   :  { %1037 = shalt.err (!%p1034_p5)
}
 0x285   :  { %670 = dma.vmem_to_hbm [thread:$0]  %s665_s10, 256, %s1229_s6, [#allocation4], %s1050_s1, %s1050_s1, %s1051_s21  }
 0x286   :  { %1044 = dma.done.wait [#allocation4], 256  }
 0x287   :  { %1045 = vsyncadd [#allocation4], 4294967040 }
 0x288   :  { %674 = vsyncpa [#allocation3], 1 }
 0x289   :  { %675 = vsyncpa [#allocation6], 1 }
 0x28a   :  { %676 = vsyncpa [#allocation9], 1 }
 0x28b   :  { %677 = vsyncpa [#allocation4], 1 }

// kernel: tpu_custom_call.1
= control target key start
LH: loop header
LB: loop body
LE: loop exit
PB: predicated region body
PF: predicated region fallthrough
CT: control target
= control target key end

     0   :  { %11 = vsyncpa [#allocation3], 0  ;;  %s1223_s0 = inlined_call_operand.hbm [shape: bf16[16,128], index: 0, kind: input, shape index: {}]   ;;  %s1224_s1 = inlined_call_operand.hbm [shape: bf16[16,128], index: 1, kind: input, shape index: {}]   ;;  %s1225_s2 = inlined_call_operand.hbm [shape: bf16[128,384], index: 2, kind: input, shape index: {}]   ;;  %s1226_s3 = inlined_call_operand.vmem [shape: f32[1,384], index: 3, kind: input, shape index: {}]   ;;  %s1227_s4 = inlined_call_operand.hbm [shape: bf16[128,256], index: 4, kind: input, shape index: {}]   ;;  %s1228_s5 = inlined_call_operand.hbm [shape: bf16[128,128], index: 5, kind: input, shape index: {}]   ;;  %s1229_s6 = inlined_call_operand.hbm [shape: f32[16,128], index: 6, kind: output, shape index: {}]  }
   0x1   :  { %12 = vsyncpa [#allocation6], 0 }
   0x2   :  { %13 = vsyncpa [#allocation9], 0 }
   0x3   :  { %14 = vsyncpa [#allocation4], 0  ;;  %s1046_s21 = smov [#allocation5]   ;;  %s1047_s23 = smov [#allocation8]  }
   0x4   :  { %s32_s22 = sshll.u32 %s1046_s21, 4  ;;  %s58_s24 = sshll.u32 %s1047_s23, 4  ;;  %s33_s22 = int_to_ptr.vmem [resolvable:$true] %s32_s22  ;;  %s1096_s24 = int_to_ptr.vmem [resolvable:$true] %s58_s24 }
   0x5   :  { %s906_s27 = scalar_lea.hbm %s1224_s1, 128 }
   0x6   :  { %p907_p0 = scmp.ne.s32.totalorder %s1224_s1, %s906_s27  ;;  %p910_p1 = scmp.lt.u32.totalorder %s906_s27, %s1224_s1 }
   0x8   :  { %p912_p2 = pnand %p910_p1, %p907_p0 }
   0xa   :  { %915 = shalt.err (!%p912_p2)
}
   0xb   :  { %s916_s8 = scalar_lea.vmem %s33_s22, 128  ;;  %p921_p4 = scmp.lt.s32.totalorder %s33_s22, %s33_s22 }
   0xc   :  { %p917_p3 = scmp.ne.s32.totalorder %s33_s22, %s916_s8  ;;  %p922_p5 = scmp.lt.s32.totalorder %s916_s8, %s916_s8 }
   0xe   :  { %p923_p6 = por %p922_p5, %p921_p4 }
  0x10   :  { %p924_p7 = pnand %p923_p6, %p917_p3 }
  0x12   :  { %927 = shalt.err (!%p924_p7)
}
  0x13   :  { %s1048_s9 = smov 64   ;;  %s1049_s10 = smov 4  }
  0x14   :  { %38 = dma.hbm_to_vmem [thread:$0]  %s1224_s1, 128, %s33_s22, [#allocation6], %s1048_s9, %s1048_s9, %s1049_s10  }
  0x15   :  { %s928_s15 = scalar_lea.hbm %s1227_s4, 2048 }
  0x16   :  { %p929_p8 = scmp.ne.s32.totalorder %s1227_s4, %s928_s15  ;;  %p932_p9 = scmp.lt.u32.totalorder %s928_s15, %s1227_s4 }
  0x18   :  { %p934_p10 = pnand %p932_p9, %p929_p8 }
  0x1a   :  { %937 = shalt.err (!%p934_p10)
}
  0x1b   :  { %s938_s20 = scalar_lea.vmem %s1096_s24, 2048  ;;  %p943_p12 = scmp.lt.s32.totalorder %s1096_s24, %s1096_s24 }
  0x1c   :  { %p939_p11 = scmp.ne.s32.totalorder %s1096_s24, %s938_s20  ;;  %p944_p13 = scmp.lt.s32.totalorder %s938_s20, %s938_s20 }
  0x1e   :  { %p945_p0 = por %p944_p13, %p943_p12 }
  0x20   :  { %p946_p1 = pnand %p945_p0, %p939_p11 }
  0x22   :  { %949 = shalt.err (!%p946_p1)
}
  0x23   :  { %s1050_s1 = smov 128   ;;  %s1051_s21 = smov 8  }
  0x24   :  { %64 = dma.hbm_to_vmem [thread:$0]  %s1227_s4, 2048, %s1096_s24, [#allocation9], %s1050_s1, %s1050_s1, %s1051_s21  }
  0x25   :  { %s1052_s25 = smov [#allocation2]   ;;  %s1053_s27 = smov [#allocation7]  }
  0x26   :  { %s20_s26 = sshll.u32 %s1052_s25, 4  ;;  %s44_s28 = sshll.u32 %s1053_s27, 4  ;;  %s21_s26 = int_to_ptr.vmem [resolvable:$true] %s20_s26  ;;  %s1133_s28 = int_to_ptr.vmem [resolvable:$true] %s44_s28 }
  0x27   :  { %s950_s7 = scalar_lea.hbm %s1223_s0, 128 }
  0x28   :  { %p951_p2 = scmp.ne.s32.totalorder %s1223_s0, %s950_s7  ;;  %p954_p3 = scmp.lt.u32.totalorder %s950_s7, %s1223_s0 }
  0x2a   :  { %p956_p4 = pnand %p954_p3, %p951_p2 }
  0x2c   :  { %959 = shalt.err (!%p956_p4)
}
  0x2d   :  { %s960_s4 = scalar_lea.vmem %s21_s26, 128  ;;  %p965_p6 = scmp.lt.s32.totalorder %s21_s26, %s21_s26 }
  0x2e   :  { %p961_p5 = scmp.ne.s32.totalorder %s21_s26, %s960_s4  ;;  %p966_p7 = scmp.lt.s32.totalorder %s960_s4, %s960_s4 }
  0x30   :  { %p967_p8 = por %p966_p7, %p965_p6 }
  0x32   :  { %p968_p9 = pnand %p967_p8, %p961_p5 }
  0x34   :  { %971 = shalt.err (!%p968_p9)
}
  0x35   :  { %26 = dma.hbm_to_vmem [thread:$0]  %s1223_s0, 128, %s21_s26, [#allocation3], %s1048_s9, %s1048_s9, %s1049_s10  }
  0x36   :  { %s972_s17 = scalar_lea.hbm %s1225_s2, 3072 }
  0x37   :  { %p973_p10 = scmp.ne.s32.totalorder %s1225_s2, %s972_s17  ;;  %p976_p11 = scmp.lt.u32.totalorder %s972_s17, %s1225_s2 }
  0x39   :  { %p978_p12 = pnand %p976_p11, %p973_p10 }
  0x3b   :  { %981 = shalt.err (!%p978_p12)
}
  0x3c   :  { %s982_s23 = scalar_lea.vmem %s1133_s28, 3072  ;;  %p987_p0 = scmp.lt.s32.totalorder %s1133_s28, %s1133_s28 }
  0x3d   :  { %p983_p13 = scmp.ne.s32.totalorder %s1133_s28, %s982_s23  ;;  %p988_p1 = scmp.lt.s32.totalorder %s982_s23, %s982_s23 }
  0x3f   :  { %p989_p2 = por %p988_p1, %p987_p0 }
  0x41   :  { %p990_p3 = pnand %p989_p2, %p983_p13 }
  0x43   :  { %993 = shalt.err (!%p990_p3)
}
  0x44   :  { %s1054_s0 = smov 192   ;;  %s1055_s25 = smov 12  }
  0x45   :  { %50 = dma.hbm_to_vmem [thread:$0]  %s1225_s2, 3072, %s1133_s28, [#allocation6], %s1054_s0, %s1054_s0, %s1055_s25  }
  0x46   :  { %s1056_s29 = smov [#allocation10]   ;;  %s994_s11 = scalar_lea.hbm %s1228_s5, 1024 }
  0x47   :  { %s70_s30 = sshll.u32 %s1056_s29, 4  ;;  %p995_p4 = scmp.ne.s32.totalorder %s1228_s5, %s994_s11  ;;  %s71_s30 = int_to_ptr.vmem [resolvable:$true] %s70_s30 }
  0x48   :  { %p998_p5 = scmp.lt.u32.totalorder %s994_s11, %s1228_s5 }
  0x4a   :  { %p1000_p6 = pnand %p998_p5, %p995_p4 }
  0x4c   :  { %1003 = shalt.err (!%p1000_p6)
}
  0x4d   :  { %s1004_s14 = scalar_lea.vmem %s71_s30, 1024  ;;  %p1009_p8 = scmp.lt.s32.totalorder %s71_s30, %s71_s30 }
  0x4e   :  { %p1005_p7 = scmp.ne.s32.totalorder %s71_s30, %s1004_s14  ;;  %p1010_p9 = scmp.lt.s32.totalorder %s1004_s14, %s1004_s14 }
  0x50   :  { %p1011_p10 = por %p1010_p9, %p1009_p8 }
  0x52   :  { %p1012_p11 = pnand %p1011_p10, %p1005_p7 }
  0x54   :  { %1015 = shalt.err (!%p1012_p11)
}
  0x55   :  { %76 = dma.hbm_to_vmem [thread:$0]  %s1228_s5, 1024, %s71_s30, [#allocation9], %s1048_s9, %s1048_s9, %s1049_s10  }
  0x56   :  { %1038 = dma.done.wait [#allocation3], 128  }
  0x57   :  { %1039 = vsyncadd [#allocation3], 4294967168 }
  0x58   :  { %1040 = dma.done.wait [#allocation6], 3200  }
  0x59   :  { %1041 = vsyncadd [#allocation6], 4294964096 }
  0x5a   :  { %1042 = dma.done.wait [#allocation9], 3072  }
  0x5b   :  { %1043 = vsyncadd [#allocation9], 4294964224  ;;  %v1057_v0 = vmov 0   ;;  %v1058_v1 = vmov 0.0   ;;  %v819_v2 = vld [vmem:[#allocation7 + $0x4] ss:$12 sps:$4 sm:$0xff]   ;;  %v133_v52 = vlaneseq }
  0x5c   :  { %314 = vmatprep.mubr.bf16.mxu0 %v1057_v0  ;;  %750 = vmatprep.subr.bf16.mxu1 %v1058_v1  ;;  %v821_v3 = vld [vmem:[#allocation7] ss:$12 sps:$4 sm:$0xff]   ;;  %v822_v4 = vld [vmem:[#allocation7 + $0x1c] ss:$12 sps:$4 sm:$0xff]   ;;  %v824_v5 = vld [vmem:[#allocation7 + $0x18] ss:$12 sps:$4 sm:$0xff]  }
  0x5d   :  { %282 = vmatprep.subr.bf16.mxu0 %v819_v2  ;;  %v825_v6 = vld [vmem:[#allocation7 + $0x34] ss:$12 sps:$4 sm:$0xff]   ;;  %v827_v7 = vld [vmem:[#allocation7 + $0x30] ss:$12 sps:$4 sm:$0xff]   ;;  %v828_v8 = vld [vmem:[#allocation7 + $0x4c] ss:$12 sps:$4 sm:$0xff]  }
  0x5e   :  { %283 = vmatpush1.bf16.msra.mxu0 %v821_v3  ;;  %v830_v9 = vld [vmem:[#allocation7 + $0x48] ss:$12 sps:$4 sm:$0xff]   ;;  %v831_v10 = vld [vmem:[#allocation7 + $0x64] ss:$12 sps:$4 sm:$0xff]   ;;  %v833_v11 = vld [vmem:[#allocation7 + $0x60] ss:$12 sps:$4 sm:$0xff]  }
  0x5f   :  { %284 = vmatprep.subr.bf16.mxu0 %v822_v4  ;;  %v834_v12 = vld [vmem:[#allocation7 + $0x7c] ss:$12 sps:$4 sm:$0xff]   ;;  %v836_v13 = vld [vmem:[#allocation7 + $0x78] ss:$12 sps:$4 sm:$0xff]   ;;  %v837_v14 = vld [vmem:[#allocation7 + $0x94] ss:$12 sps:$4 sm:$0xff]  }
  0x60   :  { %v839_v15 = vld [vmem:[#allocation7 + $0x90] ss:$12 sps:$4 sm:$0xff]   ;;  %v869_v16 = vld [vmem:[#allocation7 + $0x8] ss:$12 sps:$4 sm:$0xff]   ;;  %v840_v17 = vld [vmem:[#allocation7 + $0xac] ss:$12 sps:$4 sm:$0xff]  }
  0x61   :  { %751 = vmatpush3.bf16.msra.mxu1 %v869_v16  ;;  %v870_v18 = vld [vmem:[#allocation7 + $0x20] ss:$12 sps:$4 sm:$0xff]   ;;  %v842_v19 = vld [vmem:[#allocation7 + $0xa8] ss:$12 sps:$4 sm:$0xff]   ;;  %v871_v23 = vld [vmem:[#allocation7 + $0x38] ss:$12 sps:$4 sm:$0xff]  }
  0x62   :  { %285 = vmatpush1.bf16.msra.mxu0 %v824_v5  ;;  %752 = vmatprep.subr.bf16.mxu1 %v1058_v1  ;;  %v845_v20 = vld [vmem:[#allocation8 + $0x4] ss:$8 sps:$4 sm:$0xff]   ;;  %v843_v21 = vld [vmem:[#allocation8] ss:$8 sps:$4 sm:$0xff]   ;;  %v846_v22 = vld [vmem:[#allocation2] sm:$0xff]   ;;  %vm1059_vm0 = vmmov 0  }
  0x63   :  { %286 = vmatprep.subr.bf16.mxu0 %v825_v6  ;;  %v849_v24 = vld [vmem:[#allocation8 + $0x14] ss:$8 sps:$4 sm:$0xff]   ;;  %v847_v26 = vld [vmem:[#allocation8 + $0x10] ss:$8 sps:$4 sm:$0xff]   ;;  %v852_v27 = vld [vmem:[#allocation8 + $0x24] ss:$8 sps:$4 sm:$0xff]   ;;  %766 = vmatprep.mubr.msk.bf16.mxu1 %vm1059_vm0, %v1058_v1 }
  0x64   :  { %v872_v25 = vld [vmem:[#allocation7 + $0x50] ss:$12 sps:$4 sm:$0xff]   ;;  %v873_v28 = vld [vmem:[#allocation7 + $0x68] ss:$12 sps:$4 sm:$0xff]   ;;  %v874_v31 = vld [vmem:[#allocation7 + $0x80] ss:$12 sps:$4 sm:$0xff]  }
  0x65   :  { %753 = vmatpush3.bf16.msra.mxu1 %v870_v18  ;;  %v850_v29 = vld [vmem:[#allocation8 + $0x20] ss:$8 sps:$4 sm:$0xff]   ;;  %v855_v30 = vld [vmem:[#allocation8 + $0x34] ss:$8 sps:$4 sm:$0xff]   ;;  %v853_v32 = vld [vmem:[#allocation8 + $0x30] ss:$8 sps:$4 sm:$0xff]  }
  0x66   :  { %287 = vmatpush1.bf16.msra.mxu0 %v827_v7  ;;  %754 = vmatprep.subr.bf16.mxu1 %v1058_v1  ;;  %v858_v33 = vld [vmem:[#allocation8 + $0x44] ss:$8 sps:$4 sm:$0xff]   ;;  %v856_v35 = vld [vmem:[#allocation8 + $0x40] ss:$8 sps:$4 sm:$0xff]   ;;  %v861_v36 = vld [vmem:[#allocation8 + $0x54] ss:$8 sps:$4 sm:$0xff]  }
  0x67   :  { %288 = vmatprep.subr.bf16.mxu0 %v828_v8  ;;  %v875_v34 = vld [vmem:[#allocation7 + $0x98] ss:$12 sps:$4 sm:$0xff]   ;;  %v862_v39 = vld [vmem:[#allocation8 + $0x60] ss:$8 sps:$4 sm:$0xff]   ;;  %v867_v40 = vld [vmem:[#allocation8 + $0x74] ss:$8 sps:$4 sm:$0xff]  }
  0x68   :  { %v859_v37 = vld [vmem:[#allocation8 + $0x50] ss:$8 sps:$4 sm:$0xff]   ;;  %v864_v38 = vld [vmem:[#allocation8 + $0x64] ss:$8 sps:$4 sm:$0xff]   ;;  %v134_v53 = vshrl.u32 %v133_v52, 7 }
  0x69   :  { %755 = vmatpush3.bf16.msra.mxu1 %v871_v23  ;;  %v865_v41 = vld [vmem:[#allocation8 + $0x70] ss:$8 sps:$4 sm:$0xff]   ;;  %v877_v44 = vld [vmem:[#allocation10] sm:$0xff]   ;;  %v878_v45 = vld [vmem:[#allocation10 + $0x8] sm:$0xff]  }
  0x6a   :  { %289 = vmatpush1.bf16.msra.mxu0 %v830_v9  ;;  %756 = vmatprep.subr.bf16.mxu1 %v1058_v1  ;;  %v1190_v42 = vld [vmem:[#allocation5] sm:$0xff]   ;;  %v879_v46 = vld [vmem:[#allocation10 + $0x10] sm:$0xff]   ;;  %v881_v48 = vld [vmem:[#allocation10 + $0x20] sm:$0xff]   ;;  %v139_v54 = vsub.s32 1, %v134_v53  ;;  %v143_v18 = vsub.s32 2, %v134_v53 }
  0x6b   :  { %290 = vmatprep.subr.bf16.mxu0 %v831_v10  ;;  %v876_v43 = vld [vmem:[#allocation7 + $0xb0] ss:$12 sps:$4 sm:$0xff]   ;;  %v882_v49 = vld [vmem:[#allocation10 + $0x28] sm:$0xff]   ;;  %v97_v5 = vunpack.c.l.bf16 %v1190_v42  ;;  %v98_v6 = vunpack.c.h.bf16 %v1190_v42 }
  0x6c   :  { %v880_v47 = vld [vmem:[#allocation10 + $0x18] sm:$0xff]   ;;  %v883_v50 = vld [vmem:[#allocation10 + $0x30] sm:$0xff]  }
  0x6d   :  { %757 = vmatpush3.bf16.msra.mxu1 %v872_v25  ;;  %v884_v51 = vld [vmem:[#allocation10 + $0x38] sm:$0xff]   ;;  %v131_v55 = vld [vmem:[%s1226_s3] sm:$0x7]  ;;  %s1060_s3 = smov [#allocation11]  }
  0x6e   :  { %291 = vmatpush1.bf16.msra.mxu0 %v833_v11  ;;  %758 = vmatprep.subr.bf16.mxu1 %v1058_v1  ;;  %v140_v56 = vrot.slane %v131_v55, %v139_v54  ;;  %s664_s10 = sshll.u32 %s1060_s3, 4  ;;  %s665_s10 = int_to_ptr.vmem [resolvable:$true] %s664_s10 }
  0x6f   :  { %292 = vmatprep.subr.bf16.mxu0 %v834_v12  ;;  %v135_v12 = vsub.s32 0, %v134_v53  ;;  %s1016_s15 = scalar_lea.vmem %s665_s10, 256  ;;  %p1021_p13 = scmp.lt.s32.totalorder %s665_s10, %s665_s10 }
  0x70   :  { %p1017_p12 = scmp.ne.s32.totalorder %s665_s10, %s1016_s15  ;;  %p1022_p0 = scmp.lt.s32.totalorder %s1016_s15, %s1016_s15 }
  0x71   :  { %759 = vmatpush3.bf16.msra.mxu1 %v873_v28 }
  0x72   :  { %293 = vmatpush1.bf16.msra.mxu0 %v836_v13  ;;  %760 = vmatprep.subr.bf16.mxu1 %v1058_v1  ;;  %v136_v13 = vrot.slane %v131_v55, %v135_v12  ;;  %p1023_p1 = por %p1022_p0, %p1021_p13 }
  0x73   :  { %294 = vmatprep.subr.bf16.mxu0 %v837_v14 }
  0x74   :  { %p1024_p2 = pnand %p1023_p1, %p1017_p12 }
  0x75   :  { %761 = vmatpush3.bf16.msra.mxu1 %v874_v31 }
  0x76   :  { %295 = vmatpush1.bf16.msra.mxu0 %v839_v15  ;;  %762 = vmatprep.subr.bf16.mxu1 %v1058_v1 }
  0x77   :  { %296 = vmatprep.subr.bf16.mxu0 %v840_v17 }
  0x79   :  { %763 = vmatpush3.bf16.msra.mxu1 %v875_v34 }
  0x7a   :  { %297 = vmatpush1.bf16.msra.mxu0 %v842_v19  ;;  %764 = vmatprep.subr.bf16.mxu1 %v1058_v1 }
  0x7b   :  { %468 = vmatprep.subr.bf16.mxu0 %v845_v20  ;;  %v144_v20 = vrot.slane %v131_v55, %v143_v18 }
  0x7d   :  { %315 = vmatmul.mubr.bf16.vlgmr.msra.gmra.mrb[0].mxu0 %v846_v22  ;;  %765 = vmatpush3.bf16.msra.mxu1 %v876_v43 }
  0x7e   :  { %469 = vmatpush1.bf16.msra.mxu0 %v843_v21  ;;  %500 = vmatprep.mubr.bf16.mxu0 %v1057_v0 }
  0x7f   :  { %470 = vmatprep.subr.bf16.mxu0 %v849_v24  ;;  %770 = vmatprep.subr.bf16.mxu1 %v1058_v1 }
  0x80   :  { %767 = vmatmul.mubr.bf16.vlgmr.msra.gmra.mrb[0].mxu1 %v846_v22 }
  0x81   :  { %771 = vmatpush3.bf16.msra.mxu1 %v877_v44  ;;  %786 = vmatprep.mubr.msk.bf16.mxu1 %vm1059_vm0, %v1058_v1 }
  0x82   :  { %471 = vmatpush1.bf16.msra.mxu0 %v847_v26  ;;  %772 = vmatprep.subr.bf16.mxu1 %v1058_v1 }
  0x83   :  { %472 = vmatprep.subr.bf16.mxu0 %v852_v27 }
  0x85   :  { %773 = vmatpush3.bf16.msra.mxu1 %v878_v45 }
  0x86   :  { %473 = vmatpush1.bf16.msra.mxu0 %v850_v29  ;;  %774 = vmatprep.subr.bf16.mxu1 %v1058_v1 }
  0x87   :  { %474 = vmatprep.subr.bf16.mxu0 %v855_v30 }
  0x89   :  { %775 = vmatpush3.bf16.msra.mxu1 %v879_v46 }
  0x8a   :  { %475 = vmatpush1.bf16.msra.mxu0 %v853_v32  ;;  %776 = vmatprep.subr.bf16.mxu1 %v1058_v1 }
  0x8b   :  { %476 = vmatprep.subr.bf16.mxu0 %v858_v33 }
  0x8d   :  { %777 = vmatpush3.bf16.msra.mxu1 %v880_v47 }
  0x8e   :  { %477 = vmatpush1.bf16.msra.mxu0 %v856_v35  ;;  %778 = vmatprep.subr.bf16.mxu1 %v1058_v1 }
  0x8f   :  { %478 = vmatprep.subr.bf16.mxu0 %v861_v36 }
  0x91   :  { %779 = vmatpush3.bf16.msra.mxu1 %v881_v48 }
  0x92   :  { %479 = vmatpush1.bf16.msra.mxu0 %v859_v37  ;;  %780 = vmatprep.subr.bf16.mxu1 %v1058_v1 }
  0x93   :  { %480 = vmatprep.subr.bf16.mxu0 %v864_v38 }
  0x95   :  { %781 = vmatpush3.bf16.msra.mxu1 %v882_v49 }
  0x96   :  { %481 = vmatpush1.bf16.msra.mxu0 %v862_v39  ;;  %782 = vmatprep.subr.bf16.mxu1 %v1058_v1 }
  0x97   :  { %482 = vmatprep.subr.bf16.mxu0 %v867_v40 }
  0x99   :  { %783 = vmatpush3.bf16.msra.mxu1 %v883_v50 }
  0x9a   :  { %483 = vmatpush1.bf16.msra.mxu0 %v865_v41  ;;  %784 = vmatprep.subr.bf16.mxu1 %v1058_v1 }
  0x9d   :  { %501 = vmatmul.mubr.bf16.vlgmr.msra.gmra.mrb[0].mxu0 %v1190_v42  ;;  %785 = vmatpush3.bf16.msra.mxu1 %v884_v51 }
 0x170   :  { %v502_v57 = vpop.f32.mrb[0].mxu0 }
 0x171   :  { %v504_v58 = vpop.f32.mrb[1].mxu0  ;;  %v790_v14 = vadd.f32 %v502_v57, %v136_v13 }
 0x172   :  { %v791_v59 = vadd.f32 %v504_v58, %v140_v56  ;;  %v506_v60 = vpop.f32.mrb[2].mxu0 }
 0x173   :  { %v508_v61 = vpop.f32.mrb[3].mxu0  ;;  %v792_v15 = vadd.f32 %v506_v60, %v136_v13  ;;  %v720_v16 = vmul.f32 -1.442695, %v790_v14 }
 0x174   :  { %v722_v62 = vmul.f32 -1.442695, %v791_v59  ;;  %v793_v63 = vadd.f32 %v508_v61, %v140_v56 }
 0x175   :  { %v721_v17 = vmul.f32 -1.442695, %v792_v15 }
 0x176   :  { %886 = vpow2.f32 %v722_v62  ;;  %v723_v0 = vmul.f32 -1.442695, %v793_v63 }
 0x178   :  { %888 = vpow2.f32 %v723_v0 }
 0x180   :  { %v887_v1 = vpop.eup %886 }
 0x181   :  { %v533_v2 = vadd.f32 1.0, %v887_v1 }
 0x182   :  { %v889_v3 = vpop.eup %888 }
 0x183   :  { %890 = vrcp.f32 %v533_v2  ;;  %v534_v4 = vadd.f32 1.0, %v889_v3 }
 0x185   :  { %892 = vrcp.f32 %v534_v4 }
 0x186   :  { %894 = vpow2.f32 %v720_v16 }
 0x187   :  { %896 = vpow2.f32 %v721_v17 }
 0x18d   :  { %v891_v7 = vpop.eup %890 }
 0x18e   :  { %v539_v9 = vmul.f32 %v891_v7, %v97_v5 }
 0x18f   :  { %v893_v8 = vpop.eup %892 }
 0x190   :  { %v540_v10 = vmul.f32 %v893_v8, %v98_v6  ;;  %v895_v19 = vpop.eup %894 }
 0x191   :  { %v897_v21 = vpop.eup %896  ;;  %v519_v22 = vadd.f32 1.0, %v895_v19 }
 0x192   :  { %v541_v11 = vpack.c.bf16 %v540_v10, %v539_v9  ;;  %v520_v27 = vadd.f32 1.0, %v897_v21 }
 0x194   :  { %787 = vmatmul.mubr.bf16.vlgmr.msra.gmra.mrb[0].mxu1 %v541_v11 }
 0x267   :  { %v640_v23 = vpop.f32.mrb[0].mxu1 }
 0x268   :  { %v794_v24 = vadd.f32 %v640_v23, %v144_v20  ;;  %v788_v25 = vpop.f32.mrb[1].mxu1 }
 0x269   :  { %v643_v26 = vpop.f32.mrb[2].mxu1 }
 0x26a   :  { %898 = vtanh.f32 %v794_v24  ;;  %v795_v28 = vadd.f32 %v643_v26, %v144_v20  ;;  %v789_v29 = vpop.f32.mrb[3].mxu1 }
 0x26b   :  { %900 = vrcp.f32 %v519_v22 }
 0x26c   :  { %902 = vtanh.f32 %v795_v28 }
 0x26d   :  { %904 = vrcp.f32 %v520_v27 }
 0x274   :  { %v899_v30 = vpop.eup %898 }
 0x275   :  { %v901_v31 = vpop.eup %900  ;;  %v651_v32 = vsub.f32 %v97_v5, %v899_v30 }
 0x276   :  { %v903_v33 = vpop.eup %902 }
 0x277   :  { %v652_v34 = vsub.f32 %v98_v6, %v903_v33  ;;  %v653_v35 = vmul.f32 %v901_v31, %v651_v32  ;;  %v905_v36 = vpop.eup %904 }
 0x279   :  { %v654_v37 = vmul.f32 %v905_v36, %v652_v34  ;;  %v655_v38 = vadd.f32 %v899_v30, %v653_v35 }
 0x27b   :  { %v656_v39 = vadd.f32 %v903_v33, %v654_v37  ;;  %657 = vst [vmem:[#allocation11] sm:$0xff] %v655_v38 }
 0x27d   :  { %658 = vst [vmem:[#allocation11 + $0x8] sm:$0xff] %v656_v39 }
 0x27e   :  { %1027 = shalt.err (!%p1024_p2)
}
 0x27f   :  { %s1028_s18 = scalar_lea.hbm %s1229_s6, 256 }
 0x280   :  { %p1029_p3 = scmp.ne.s32.totalorder %s1229_s6, %s1028_s18  ;;  %p1032_p4 = scmp.lt.u32.totalorder %s1028_s18, %s1229_s6 }
 0x282   :  { %p1034_p5 = pnand %p1032_p4, %p1029_p3 }
 0x284   :  { %1037 = shalt.err (!%p1034_p5)
}
 0x285   :  { %670 = dma.vmem_to_hbm [thread:$0]  %s665_s10, 256, %s1229_s6, [#allocation4], %s1050_s1, %s1050_s1, %s1051_s21  }
 0x286   :  { %1044 = dma.done.wait [#allocation4], 256  }
 0x287   :  { %1045 = vsyncadd [#allocation4], 4294967040 }
 0x288   :  { %674 = vsyncpa [#allocation3], 1 }
 0x289   :  { %675 = vsyncpa [#allocation6], 1 }
 0x28a   :  { %676 = vsyncpa [#allocation9], 1 }
 0x28b   :  { %677 = vsyncpa [#allocation4], 1 }

</bundles_post_ra>
